<compile_context>
chip_gen: v7x
topology: tpu7x:2x2x1
jax: 0.10.0
libtpu: 0.0.40
codegen_flags: <defaults>
</compile_context>

<pallas_src>
import jax
import jax.numpy as jnp
from jax.experimental import pallas as pl
from jax.experimental.pallas import tpu as pltpu


# ----------------------------------------------------------------------------
# Activation bank (the `all_act_funcs` of MultiActivationModule).
# Kernel version rewrites sigmoid through tanh (single EUP op); reference
# keeps the canonical definitions.
# ----------------------------------------------------------------------------
ACT_FUNCS_KERNEL = (
    lambda v: jnp.maximum(v, 0.0),               # relu
    jnp.tanh,                                    # tanh
    lambda v: 0.5 * (jnp.tanh(0.5 * v) + 1.0),   # sigmoid == 0.5*(tanh(v/2)+1)
    jnp.sin,                                     # sin
)
ACT_FUNCS_REF = (
    lambda v: jnp.maximum(v, 0.0),
    jnp.tanh,
    jax.nn.sigmoid,
    jnp.sin,
)
NUM_FUNCS = len(ACT_FUNCS_REF)


def _round_up(a, b):
    return -(-a // b) * b


# ----------------------------------------------------------------------------
# Pallas kernel: one grid step per M-tile of rows (rows = W*B collapsed).
#   x_ref     : VMEM (tm, F_in)    x.dtype  input rows for this tile
#   scale_ref : VMEM (tm, 1)       f32      shared_weight broadcast per row
#   w_ref     : VMEM (F_in, Np)    bf16     pre-transposed connections (resident)
#   mask_ref  : VMEM (K, Np)       f32      activation-selection mask (resident)
#   out_ref   : VMEM (tm, F_in+Np) x.dtype  fused [x | inner_out] row slab
# ----------------------------------------------------------------------------
def concat_fused_kernel(x_ref, scale_ref, w_ref, mask_ref, out_ref):
    x_val = x_ref[...]                                            # (tm, F_in)

    # Hot path 1: MXU matmul, bf16 operands, f32 accumulation.
    lin = jnp.dot(x_val.astype(jnp.bfloat16), w_ref[...],
                  preferred_element_type=jnp.float32)             # (tm, Np)
    # Per-row shared-weight scale (== scaling `linear` in the PyTorch module).
    lin = lin * scale_ref[...]                                    # (tm, Np)*(tm, 1)

    # Hot path 2: multi-activation, masked per node column.
    # TODO(synk): for large N, group node columns by activation id via scalar
    # prefetch and apply each activation only to its group (~4x less EUP work).
    inner = ACT_FUNCS_KERNEL[0](lin) * mask_ref[0:1, :]
    for k in range(1, len(ACT_FUNCS_KERNEL)):
        inner = inner + ACT_FUNCS_KERNEL[k](lin) * mask_ref[k : k + 1, :]

    # Fused concat: passthrough x occupies the first F_in lanes, inner_out the
    # rest; single lane-dense, unmasked full-block store.
    full = jnp.concatenate([x_val.astype(jnp.float32), inner], axis=-1)
    out_ref[...] = full.astype(out_ref.dtype)


# ----------------------------------------------------------------------------
# Wrapper
# ----------------------------------------------------------------------------
def concat_layer(x, connections, shared_weight, mask, *, tm=256):
    """x: (W, B, F_in); connections: (N, F_in); shared_weight: (W,);
    mask: (N, K) one-hot activation selection. Returns (W, B, F_in + N)."""
    W, B, F_in = x.shape
    N = connections.shape[0]
    K = mask.shape[1]
    assert K == NUM_FUNCS, "mask width must match the activation bank"

    M = W * B
    # Row-tile size: multiple of 8 sublanes, no bigger than the (padded) M.
    m_pad8 = _round_up(M, 8)
    tm = min(_round_up(tm, 8), m_pad8)
    M_pad = _round_up(m_pad8, tm)
    # Lane-dense fused output width; inner gets the remaining lanes.
    F_out = F_in + N
    Fp = _round_up(max(F_out, 128), 128)
    N_pad = Fp - F_in                                              # >= N

    # Collapse W into the matmul M dimension; per-row shared-weight scale.
    x2 = x.reshape(M, F_in)
    row_scale = jnp.repeat(shared_weight.astype(jnp.float32), B)[:, None]  # (M,1)
    if M_pad > M:
        x2 = jnp.pad(x2, ((0, M_pad - M), (0, 0)))
        row_scale = jnp.pad(row_scale, ((0, M_pad - M), (0, 0)))

    # Pre-transpose connections once (no in-kernel XLU transpose); pad N.
    # bf16 operands for the MXU (connections are 0/1 -> exact in bf16).
    w_t = connections.T.astype(jnp.bfloat16)                      # (F_in, N)
    mask_t = mask.T.astype(jnp.float32)                           # (K, N)
    if N_pad > N:
        w_t = jnp.pad(w_t, ((0, 0), (0, N_pad - N)))
        mask_t = jnp.pad(mask_t, ((0, 0), (0, N_pad - N)))

    grid = (M_pad // tm,)

    out_full = pl.pallas_call(
        concat_fused_kernel,
        out_shape=jax.ShapeDtypeStruct((M_pad, Fp), x.dtype),
        grid_spec=pltpu.PrefetchScalarGridSpec(
            num_scalar_prefetch=0,
            grid=grid,
            in_specs=[
                pl.BlockSpec((tm, F_in), lambda i: (i, 0)),       # x rows
                pl.BlockSpec((tm, 1), lambda i: (i, 0)),          # per-row scale
                pl.BlockSpec((F_in, N_pad), lambda i: (0, 0)),    # weight (resident)
                pl.BlockSpec((K, N_pad), lambda i: (0, 0)),       # mask (resident)
            ],
            out_specs=pl.BlockSpec((tm, Fp), lambda i: (i, 0)),
        ),
        compiler_params=pltpu.CompilerParams(
            dimension_semantics=("parallel",),
        ),
    )(x2, row_scale, w_t, mask_t)

    # Only padding is trimmed here; the concat itself happened in-kernel.
    return out_full[:M, :F_out].reshape(W, B, F_out)


# ----------------------------------------------------------------------------
# Pure-JAX references
# ----------------------------------------------------------------------------
def concat_layer_ref(x, connections, shared_weight, mask):
    """Full-f32 reference (mirrors the PyTorch forward exactly)."""
    lin = jnp.einsum("wbf,nf->wbn", x, connections,
                     precision=jax.lax.Precision.HIGHEST)
    lin = lin * shared_weight[:, None, None]
    inner = jnp.zeros_like(lin)
    for k, act in enumerate(ACT_FUNCS_REF):
        inner = inner + act(lin) * mask[:, k]
    return jnp.concatenate([x, inner], axis=-1)


def concat_layer_ref_bf16(x, connections, shared_weight, mask):
    """Reference with the same bf16-operand / f32-accumulate matmul numerics
    as the kernel (tight-tolerance check)."""
    lin = jnp.einsum("wbf,nf->wbn",
                     x.astype(jnp.bfloat16), connections.astype(jnp.bfloat16),
                     preferred_element_type=jnp.float32)
    lin = lin * shared_weight[:, None, None]
    inner = jnp.zeros_like(lin)
    for k, act in enumerate(ACT_FUNCS_REF):
        inner = inner + act(lin) * mask[:, k]
    return jnp.concatenate([x, inner], axis=-1)


if __name__ == "__main__":
    key = jax.random.PRNGKey(0)
    kx, kw, ksw = jax.random.split(key, 3)

    W, B, F_IN, N_NODES = 3, 8, 32, 16  # weight samples, batch, features, nodes

    x = jax.random.normal(kx, (W, B, F_IN), dtype=jnp.float32)
    # "connections" in WANN are sparse 0/1-ish weights; deterministic random.
    connections = (jax.random.uniform(kw, (N_NODES, F_IN)) > 0.5).astype(jnp.float32)
    shared_weight = jax.random.normal(ksw, (W,), dtype=jnp.float32)

    # node_act_funcs: deterministic assignment of an activation index per node.
    node_act_funcs = [i % NUM_FUNCS for i in range(N_NODES)]
    mask = jnp.zeros((N_NODES, NUM_FUNCS), dtype=jnp.float32)
    mask = mask.at[jnp.arange(N_NODES), jnp.array(node_act_funcs)].set(1.0)

    out = concat_layer(x, connections, shared_weight, mask)
    out = jax.block_until_ready(out)
    assert out.shape == (W, B, F_IN + N_NODES)

    # Passthrough half must be bit-exact.
    assert jnp.array_equal(out[..., :F_IN], x)

    # Tight check against a reference with matching matmul numerics.
    ref_bf16 = concat_layer_ref_bf16(x, connections, shared_weight, mask)
    assert jnp.allclose(out, ref_bf16, atol=1e-4, rtol=1e-4)

    # Semantic check against the full-f32 reference (tolerance accounts for the
    # bf16 MXU operands).
    ref_f32 = concat_layer_ref(x, connections, shared_weight, mask)
    assert jnp.allclose(out, ref_f32, atol=5e-2, rtol=5e-2)

    print("KERNEL_OK")
</pallas_src>

<mosaic_0001>
module attributes {stable_mosaic.version = 11 : i64} {
  func.func @concat_fused_kernel(%arg0: i32, %arg1: memref<24x32xf32, #tpu.memory_space<vmem>>, %arg2: memref<24x1xf32, #tpu.memory_space<vmem>>, %arg3: memref<32x96xbf16, #tpu.memory_space<vmem>>, %arg4: memref<4x96xf32, #tpu.memory_space<vmem>>, %arg5: memref<24x128xf32, #tpu.memory_space<vmem>>) attributes {dimension_semantics = [#tpu.dimension_semantics<parallel>], iteration_bounds = array<i64: 1>, scalar_prefetch = 0 : i64, scratch_operands = 0 : i64, tpu.core_type = #tpu.core_type<tc>, window_params = [{transform_indices = @transform_0, window_bounds = array<i64: 24, 32>}, {transform_indices = @transform_1, window_bounds = array<i64: 24, 1>}, {pipeline_mode = #tpu.pipeline_mode<synchronous>, transform_indices = @transform_2, window_bounds = array<i64: 32, 96>}, {pipeline_mode = #tpu.pipeline_mode<synchronous>, transform_indices = @transform_3, window_bounds = array<i64: 4, 96>}, {transform_indices = @transform_4, window_bounds = array<i64: 24, 128>}]} {
    %c0 = arith.constant 0 : index
    %c0_0 = arith.constant 0 : index
    %0 = vector.load %arg1[%c0, %c0_0] : memref<24x32xf32, #tpu.memory_space<vmem>>, vector<24x32xf32>
    %1 = arith.truncf %0 : vector<24x32xf32> to vector<24x32xbf16>
    %c0_1 = arith.constant 0 : index
    %c0_2 = arith.constant 0 : index
    %2 = vector.load %arg3[%c0_1, %c0_2] : memref<32x96xbf16, #tpu.memory_space<vmem>>, vector<32x96xbf16>
    %cst = arith.constant dense<0.000000e+00> : vector<24x96xf32>
    %3 = tpu.matmul %1, %2, %cst {dimension_numbers = #tpu.dot_dimension_numbers<[1], [0], [0], [1], [0, 0, 1, 1], [], []>} : vector<24x32xbf16>, vector<32x96xbf16>, vector<24x96xf32> -> vector<24x96xf32>
    %c0_3 = arith.constant 0 : index
    %c0_4 = arith.constant 0 : index
    %4 = vector.load %arg2[%c0_3, %c0_4] : memref<24x1xf32, #tpu.memory_space<vmem>>, vector<24x1xf32>
    %5 = vector.broadcast %4 : vector<24x1xf32> to vector<24x96xf32>
    %6 = arith.mulf %3, %5 : vector<24x96xf32>
    %cst_5 = arith.constant 0.000000e+00 : f32
    %7 = vector.broadcast %cst_5 : f32 to vector<24x96xf32>
    %8 = arith.maximumf %6, %7 : vector<24x96xf32>
    %c0_6 = arith.constant 0 : index
    %c0_7 = arith.constant 0 : index
    %9 = vector.load %arg4[%c0_6, %c0_7] : memref<4x96xf32, #tpu.memory_space<vmem>>, vector<1x96xf32>
    %10 = vector.broadcast %9 : vector<1x96xf32> to vector<24x96xf32>
    %11 = arith.mulf %8, %10 : vector<24x96xf32>
    %12 = math.tanh %6 : vector<24x96xf32>
    %c1 = arith.constant 1 : index
    %c0_8 = arith.constant 0 : index
    %13 = vector.load %arg4[%c1, %c0_8] : memref<4x96xf32, #tpu.memory_space<vmem>>, vector<1x96xf32>
    %14 = vector.broadcast %13 : vector<1x96xf32> to vector<24x96xf32>
    %15 = arith.mulf %12, %14 : vector<24x96xf32>
    %16 = arith.addf %11, %15 : vector<24x96xf32>
    %cst_9 = arith.constant 5.000000e-01 : f32
    %17 = vector.broadcast %cst_9 : f32 to vector<24x96xf32>
    %18 = arith.mulf %17, %6 : vector<24x96xf32>
    %19 = math.tanh %18 : vector<24x96xf32>
    %cst_10 = arith.constant 1.000000e+00 : f32
    %20 = vector.broadcast %cst_10 : f32 to vector<24x96xf32>
    %21 = arith.addf %19, %20 : vector<24x96xf32>
    %cst_11 = arith.constant 5.000000e-01 : f32
    %22 = vector.broadcast %cst_11 : f32 to vector<24x96xf32>
    %23 = arith.mulf %22, %21 : vector<24x96xf32>
    %c2 = arith.constant 2 : index
    %c0_12 = arith.constant 0 : index
    %24 = vector.load %arg4[%c2, %c0_12] : memref<4x96xf32, #tpu.memory_space<vmem>>, vector<1x96xf32>
    %25 = vector.broadcast %24 : vector<1x96xf32> to vector<24x96xf32>
    %26 = arith.mulf %23, %25 : vector<24x96xf32>
    %27 = arith.addf %16, %26 : vector<24x96xf32>
    %28 = math.sin %6 : vector<24x96xf32>
    %c3 = arith.constant 3 : index
    %c0_13 = arith.constant 0 : index
    %29 = vector.load %arg4[%c3, %c0_13] : memref<4x96xf32, #tpu.memory_space<vmem>>, vector<1x96xf32>
    %30 = vector.broadcast %29 : vector<1x96xf32> to vector<24x96xf32>
    %31 = arith.mulf %28, %30 : vector<24x96xf32>
    %32 = arith.addf %27, %31 : vector<24x96xf32>
    %33 = tpu.concatenate %0, %32 in 1 : vector<24x32xf32>, vector<24x96xf32> -> vector<24x128xf32>
    %c0_14 = arith.constant 0 : index
    %c0_15 = arith.constant 0 : index
    %34 = vector.load %arg5[%c0_14, %c0_15] : memref<24x128xf32, #tpu.memory_space<vmem>>, vector<24x128xf32>
    tpu.vector_store %arg5[%c0_14, %c0_15], %33 {strides = array<i32>} : memref<24x128xf32, #tpu.memory_space<vmem>>, vector<24x128xf32>,
    return
  }
  func.func @transform_0(%arg0: i32) -> (i32, i32) {
    %c0_i32 = arith.constant 0 : i32
    %c0_i32_0 = arith.constant 0 : i32
    return %arg0, %c0_i32 : i32, i32
  }
  func.func @transform_1(%arg0: i32) -> (i32, i32) {
    %c0_i32 = arith.constant 0 : i32
    %c0_i32_0 = arith.constant 0 : i32
    return %arg0, %c0_i32 : i32, i32
  }
  func.func @transform_2(%arg0: i32) -> (i32, i32) {
    %c0_i32 = arith.constant 0 : i32
    %c0_i32_0 = arith.constant 0 : i32
    %c0_i32_1 = arith.constant 0 : i32
    return %c0_i32, %c0_i32_0 : i32, i32
  }
  func.func @transform_3(%arg0: i32) -> (i32, i32) {
    %c0_i32 = arith.constant 0 : i32
    %c0_i32_0 = arith.constant 0 : i32
    %c0_i32_1 = arith.constant 0 : i32
    return %c0_i32, %c0_i32_0 : i32, i32
  }
  func.func @transform_4(%arg0: i32) -> (i32, i32) {
    %c0_i32 = arith.constant 0 : i32
    %c0_i32_0 = arith.constant 0 : i32
    return %arg0, %c0_i32 : i32, i32
  }
}

</mosaic_0001>

<bundles_post_ra>
// kernel: tpu_custom_call.1
= control target key start
LH: loop header
LB: loop body
LE: loop exit
PB: predicated region body
PF: predicated region fallthrough
CT: control target
= control target key end

     0   :  { %9 = vsyncpa [#allocation3], 0  ;;  %s995_s0 = inlined_call_operand.vmem [shape: f32[24,32], index: 0, kind: input, shape index: {}]   ;;  %s996_s1 = inlined_call_operand.vmem [shape: f32[24,1], index: 1, kind: input, shape index: {}]   ;;  %s997_s2 = inlined_call_operand.hbm [shape: bf16[32,96], index: 2, kind: input, shape index: {}]   ;;  %s998_s3 = inlined_call_operand.vmem [shape: f32[4,96], index: 3, kind: input, shape index: {}]   ;;  %s999_s4 = inlined_call_operand.hbm [shape: f32[24,128], index: 4, kind: output, shape index: {}]  }
   0x1   :  { %10 = vsyncpa [#allocation4], 0  ;;  %s670_s15 = smov [#allocation2]   ;;  %s622_s19 = scalar_lea.hbm %s997_s2, 256 }
   0x2   :  { %s20_s16 = sshll.u32 %s670_s15, 4  ;;  %p623_p0 = scmp.ne.s32.totalorder %s997_s2, %s622_s19  ;;  %s21_s16 = int_to_ptr.vmem [resolvable:$true] %s20_s16 }
   0x3   :  { %p626_p1 = scmp.lt.u32.totalorder %s622_s19, %s997_s2 }
   0x5   :  { %p628_p2 = pnand %p626_p1, %p623_p0 }
   0x7   :  { %631 = shalt.err (!%p628_p2)
}
   0x8   :  { %s632_s24 = scalar_lea.vmem %s21_s16, 256  ;;  %p637_p4 = scmp.lt.s32.totalorder %s21_s16, %s21_s16 }
   0x9   :  { %p633_p3 = scmp.ne.s32.totalorder %s21_s16, %s632_s24  ;;  %p638_p5 = scmp.lt.s32.totalorder %s632_s24, %s632_s24 }
   0xb   :  { %p639_p6 = por %p638_p5, %p637_p4 }
   0xd   :  { %p640_p7 = pnand %p639_p6, %p633_p3 }
   0xf   :  { %643 = shalt.err (!%p640_p7)
}
  0x10   :  { %s671_s25 = smov 64   ;;  %s672_s26 = smov 4  }
  0x11   :  { %26 = dma.hbm_to_vmem [thread:$0]  %s997_s2, 256, %s21_s16, [#allocation3], %s671_s25, %s671_s25, %s672_s26  }
  0x12   :  { %666 = dma.done.wait [#allocation3], 256  }
  0x13   :  { %667 = vsyncadd [#allocation3], 4294967040  ;;  %v673_v0 = vmov 0   ;;  %v596_v1 = vld [vmem:[#allocation2] sm:$0xff]   ;;  %v597_v2 = vld [vmem:[#allocation2 + $0x8] sm:$0xff]   ;;  %vm54_vm0 = vcmask 261120  }
  0x14   :  { %594 = vset.pattern.permute.xlu0 %v673_v0  ;;  %595 = vset.pattern.permute.xlu1 %v673_v0  ;;  %v724_v3 = vld [vmem:[%s995_s0] sm:$0xff]  ;;  %v729_v4 = vld [vmem:[%s995_s0 + $0x8] sm:$0xff]  ;;  %v736_v6 = vld [vmem:[%s995_s0 + $0x10] sm:$0xff]  ;;  %v674_v51 = vmov 683565275   ;;  %s681_s20 = smov [#allocation5]  }
  0x15   :  { %560 = vmatprep.subr.bf16.mxu0 %v596_v1  ;;  %v36_v5 = vpack.c.bf16 %v729_v4, %v724_v3  ;;  %v109_v7 = vld [vmem:[%s996_s1] sm:$0xff]  ;;  %v111_v8 = vld [vmem:[%s996_s1 + $0x10] sm:$0xff]  ;;  %v110_v9 = vld [vmem:[%s996_s1 + $0x8] sm:$0xff]  ;;  %v37_v10 = vpack.c.bf16 %v736_v6, %v736_v6  ;;  %v675_v53 = vmov 2475754826   ;;  %s524_s21 = sshll.u32 %s681_s20, 4  ;;  %s525_s21 = int_to_ptr.vmem [resolvable:$true] %s524_s21 }
  0x16   :  { %561 = vmatpush3.bf16.msra.mxu0 %v596_v1  ;;  %114 = vperm.xlu0 %594, %v109_v7   ;;  %v768_v32 = vld [vmem:[%s998_s3] ss:$0 sm:$0xff]  ;;  %v774_v36 = vld [vmem:[%s998_s3 + $0x1] ss:$0 sm:$0xff]  ;;  %v676_v57 = vmov 2131351028   ;;  %p649_p9 = scmp.lt.s32.totalorder %s525_s21, %s525_s21 }
  0x17   :  { %562 = vmatprep.subr.bf16.mxu0 %v597_v2  ;;  %564 = vmatprep.mubr.msk.bf16.mxu0 %vm54_vm0, %v36_v5  ;;  %v677_v59 = vmov 2102212464   ;;  %v678_v61 = vmov 920167782   ;;  %v794_v5 = vld [vmem:[%s998_s3 + $0x2] ss:$0 sm:$0xff] }
  0x18   :  { %124 = vperm.xlu1 %595, %v111_v8   ;;  %s644_s22 = scalar_lea.vmem %s525_s21, 384 }
  0x19   :  { %p645_p8 = scmp.ne.s32.totalorder %s525_s21, %s644_s22  ;;  %p650_p10 = scmp.lt.s32.totalorder %s644_s22, %s644_s22 }
  0x1a   :  { %563 = vmatpush3.bf16.msra.mxu0 %v597_v2  ;;  %119 = vperm.xlu0 %594, %v110_v9   ;;  %v679_v9 = vmov 1326507024  }
  0x1b   :  { %p651_p11 = por %p650_p10, %p649_p9 }
  0x1d   :  { %565 = vmatmul.mubr.msk.bf16.vlgmr.msra.gmra.mrb[0].mxu0 %vm54_vm0, %v37_v10  ;;  %p652_p12 = pnand %p651_p11, %p645_p8 }
  0x95   :  { %v115_v11 = vpop.permute.xlu0 %114 }
  0x97   :  { %v125_v12 = vpop.permute.xlu1 %124 }
  0x99   :  { %v120_v19 = vpop.permute.xlu0 %119 }
  0xf0   :  { %v566_v13 = vpop.f32.mrb[0].mxu0 }
  0xf1   :  { %v751_v14 = vmul.f32 %v566_v13, %v125_v12  ;;  %v95_v15 = vpop.f32.mrb[1].mxu0 }
  0xf2   :  { %v753_v16 = vmul.f32 %v115_v11, %v95_v15  ;;  %v567_v17 = vpop.f32.mrb[2].mxu0 }
  0xf3   :  { %v389_v18 = vand.u32 2139095040, %v751_v14  ;;  %v98_v20 = vpop.f32.mrb[3].mxu0 }
  0xf4   :  { %v181_v21 = vand.u32 2139095040, %v753_v16  ;;  %v757_v22 = vmul.f32 %v120_v19, %v98_v20  ;;  %598 = vtanh.f32 %v753_v16  ;;  %v155_v24 = vmul.f32 0.5, %v753_v16 }
  0xf5   :  { %v390_v23 = vshrl.u32 %v389_v18, 23  ;;  %v178_v25 = vand.u32 2147483647, %v753_v16  ;;  %v130_v35 = vmax.f32 %v753_v16, 0.0 }
  0xf6   :  { %v182_v26 = vshrl.u32 %v181_v21, 23  ;;  %v285_v27 = vand.u32 2139095040, %v757_v22  ;;  %600 = vtanh.f32 %v155_v24  ;;  %v282_v44 = vand.u32 2147483647, %v757_v22 }
  0xf7   :  { %v185_v28 = vand.u32 8388607, %v178_v25  ;;  %v551_v31 = vadd.s32 4294967169, %v390_v23  ;;  %v138_v43 = vmul.f32 %v768_v32, %v130_v35 }
  0xf8   :  { %v543_v29 = vadd.s32 4294967169, %v182_v26  ;;  %v286_v30 = vshrl.u32 %v285_v27, 23 }
  0xf9   :  { %v186_v37 = vor.u32 8388608, %v185_v28  ;;  %v396_v39 = vadd.s32 1, %v551_v31 }
  0xfa   :  { %v188_v33 = vadd.s32 1, %v543_v29  ;;  %v547_v34 = vadd.s32 4294967169, %v286_v30 }
  0xfb   :  { %v779_v48 = vshll.u32 %v186_v37, 8  ;;  %vm397_vm3 = vcmp.gt.s32.totalorder %v396_v39, 0  ;;  %v289_v37 = vand.u32 8388607, %v282_v44 }
  0xfc   :  { %vm189_vm1 = vcmp.gt.s32.totalorder %v188_v33, 0  ;;  %v292_v38 = vadd.s32 1, %v547_v34 }
  0xfd   :  { %v190_v40 = vsel %vm189_vm1, %v188_v33, 0 }
  0xfe   :  { %v599_v41 = vpop.eup %598  ;;  %v192_v42 = vand.u32 31, %v190_v40  ;;  %vm293_vm2 = vcmp.gt.s32.totalorder %v292_v38, 0  ;;  %v191_v47 = vshrl.u32 %v190_v40, 5 }
  0xff   :  { %v294_v45 = vsel %vm293_vm2, %v292_v38, 0  ;;  %v149_v46 = vmul.f32 %v599_v41, %v774_v36 }
 0x100   :  { %v781_v49 = vand.u32 31, %v294_v45  ;;  %v193_v50 = vsub.s32 32, %v192_v42  ;;  %v195_v52 = vshll.u32 %v674_v51, %v192_v42  ;;  %v198_v54 = vshll.u32 %v675_v53, %v192_v42  ;;  %v601_v55 = vpop.eup %600 }
 0x101   :  { %v152_v56 = vadd.f32 %v149_v46, %v138_v43  ;;  %v201_v58 = vshll.u32 %v676_v57, %v192_v42  ;;  %v204_v60 = vshll.u32 %v677_v59, %v192_v42  ;;  %v207_v62 = vshll.u32 %v678_v61, %v192_v42 }
 0x102   :  { %v161_v63 = vadd.f32 1.0, %v601_v55  ;;  %v194_v0 = vshrl.u32 %v674_v51, %v193_v50  ;;  %v196_v1 = vshrl.u32 %v675_v53, %v193_v50  ;;  %v199_v2 = vshrl.u32 %v676_v57, %v193_v50 }
 0x103   :  { %v202_v7 = vshrl.u32 %v677_v59, %v193_v50  ;;  %v205_v8 = vshrl.u32 %v678_v61, %v193_v50  ;;  %v208_v10 = vshrl.u32 %v679_v9, %v193_v50  ;;  %vm210_vm4 = vcmp.lt.s32.totalorder %v191_v47, 1 }
 0x104   :  { %v164_v11 = vmul.f32 0.5, %v161_v63  ;;  %v197_v12 = vor.u32 %v196_v1, %v195_v52  ;;  %v200_v13 = vor.u32 %v199_v2, %v198_v54  ;;  %vm211_vm5 = vcmp.lt.s32.totalorder %v191_v47, 2 }
 0x105   :  { %v203_v15 = vor.u32 %v202_v7, %v201_v58  ;;  %v206_v17 = vor.u32 %v205_v8, %v204_v60  ;;  %v209_v18 = vor.u32 %v208_v10, %v207_v62  ;;  %vm212_vm6 = vcmp.lt.s32.totalorder %v191_v47, 3 }
 0x106   :  { %v172_v19 = vmul.f32 %v794_v5, %v164_v11  ;;  %vm213_vm7 = vcmp.lt.s32.totalorder %v191_v47, 4  ;;  %v214_v20 = vsel %vm210_vm4, %v194_v0, %v197_v12  ;;  %v218_v21 = vsel %vm210_vm4, %v197_v12, %v200_v13 }
 0x107   :  { %v215_v23 = vsel %vm213_vm7, %v203_v15, 2102212464  ;;  %v219_v24 = vsel %vm213_vm7, %v206_v17, 920167782  ;;  %v222_v26 = vsel %vm210_vm4, %v200_v13, %v203_v15  ;;  %v223_v27 = vsel %vm213_vm7, %v209_v18, 1326507024 }
 0x108   :  { %v800_v28 = vadd.f32 %v172_v19, %v152_v56  ;;  %v216_v29 = vsel %vm212_vm6, %v200_v13, %v215_v23  ;;  %v220_v30 = vsel %vm212_vm6, %v203_v15, %v219_v24  ;;  %v224_v31 = vsel %vm212_vm6, %v206_v17, %v223_v27 }
 0x109   :  { %v217_v33 = vsel %vm211_vm5, %v214_v20, %v216_v29  ;;  %v221_v34 = vsel %vm211_vm5, %v218_v21, %v220_v30  ;;  %v225_v35 = vsel %vm211_vm5, %v222_v26, %v224_v31  ;;  %v817_v43 = vsel %vm397_vm3, %v396_v39, 0 }
 0x10a   :  { %v808_v38 = vmul.u32.u64.low %v779_v48, %v225_v35  ;;  %v809_v40 = vmul.u32.u64.high %v779_v48, %v225_v35, %v808_v38  ;;  %v812_v41 = vmul.u32.u64.low %v779_v48, %v221_v34  ;;  %v813_v42 = vmul.u32.u64.high %v779_v48, %v221_v34, %v812_v41 }
 0x10b   :  { %v297_v46 = vsub.s32 32, %v781_v49  ;;  %v233_v47 = vmul.u32 %v779_v48, %v217_v33  ;;  %v290_v50 = vor.u32 8388608, %v289_v37  ;;  %v295_v52 = vshrl.u32 %v294_v45, 5 }
 0x10c   :  { %v299_v54 = vshll.u32 %v674_v51, %v781_v49  ;;  %vm235_vm8 = vc.u32 %v809_v40, %v812_v41  ;;  %v236_v55 = vadd.s32 1, %v813_v42  ;;  %v302_v56 = vshll.u32 %v675_v53, %v781_v49 }
 0x10d   :  { %v305_v39 = vshll.u32 %v676_v57, %v781_v49  ;;  %v300_v58 = vshrl.u32 %v675_v53, %v297_v46  ;;  %v303_v48 = vshrl.u32 %v676_v57, %v297_v46  ;;  %v306_v45 = vshrl.u32 %v677_v59, %v297_v46 }
 0x10e   :  { %v308_v60 = vshll.u32 %v677_v59, %v781_v49  ;;  %v237_v62 = vsel %vm235_vm8, %v236_v55, %v813_v42  ;;  %v309_v63 = vshrl.u32 %v678_v61, %v297_v46  ;;  %v311_v0 = vshll.u32 %v678_v61, %v781_v49 }
 0x10f   :  { %v312_v1 = vshrl.u32 %v679_v9, %v297_v46  ;;  %v238_v2 = vadd.s32 %v237_v62, %v233_v47  ;;  %v301_v7 = vor.u32 %v300_v58, %v299_v54  ;;  %v304_v8 = vor.u32 %v303_v48, %v302_v56 }
 0x110   :  { %vm314_vm9 = vcmp.lt.s32.totalorder %v295_v52, 1  ;;  %v298_v10 = vshrl.u32 %v674_v51, %v297_v46  ;;  %v307_v11 = vor.u32 %v306_v45, %v305_v39  ;;  %v310_v12 = vor.u32 %v309_v63, %v308_v60 }
 0x111   :  { %v313_v13 = vor.u32 %v312_v1, %v311_v0  ;;  %v239_v15 = vadd.s32 536870912, %v238_v2  ;;  %vm316_vm10 = vcmp.lt.s32.totalorder %v295_v52, 3  ;;  %vm317_vm11 = vcmp.lt.s32.totalorder %v295_v52, 4 }
 0x112   :  { %v322_v17 = vsel %vm314_vm9, %v301_v7, %v304_v8  ;;  %v319_v18 = vsel %vm317_vm11, %v307_v11, 2102212464  ;;  %v323_v19 = vsel %vm317_vm11, %v310_v12, 920167782  ;;  %v326_v49 = vsel %vm314_vm9, %v304_v8, %v307_v11 }
 0x113   :  { %v327_v20 = vsel %vm317_vm11, %v313_v13, 1326507024  ;;  %v843_v21 = vshrl.u32 %v239_v15, 30  ;;  %vm315_vm12 = vcmp.lt.s32.totalorder %v295_v52, 2  ;;  %v324_v23 = vsel %vm316_vm10, %v307_v11, %v323_v19 }
 0x114   :  { %v328_v24 = vsel %vm316_vm10, %v310_v12, %v327_v20  ;;  %v325_v26 = vsel %vm315_vm12, %v322_v17, %v324_v23  ;;  %v330_v29 = vshll.u32 %v290_v50, 8  ;;  %v400_v30 = vand.u32 31, %v817_v43 }
 0x115   :  { %v329_v27 = vsel %vm315_vm12, %v326_v49, %v328_v24  ;;  %v241_v31 = vshll.u32 %v843_v21, 30  ;;  %v318_v33 = vsel %vm314_vm9, %v298_v10, %v301_v7  ;;  %v320_v34 = vsel %vm316_vm10, %v304_v8, %v319_v18 }
 0x116   :  { %v853_v35 = vmul.u32.u64.low %v330_v29, %v329_v27  ;;  %v854_v37 = vmul.u32.u64.high %v330_v29, %v329_v27, %v853_v35  ;;  %v856_v38 = vmul.u32.u64.low %v330_v29, %v325_v26  ;;  %v857_v42 = vmul.u32.u64.high %v330_v29, %v325_v26, %v856_v38 }
 0x117   :  { %v242_v46 = vsub.s32 %v238_v2, %v241_v31  ;;  %v321_v54 = vsel %vm315_vm12, %v318_v33, %v320_v34  ;;  %v401_v50 = vsub.s32 32, %v400_v30  ;;  %v386_v48 = vand.u32 2147483647, %v751_v14 }
 0x118   :  { %vm339_vm13 = vc.u32 %v854_v37, %v856_v38  ;;  %v340_v55 = vadd.s32 1, %v857_v42  ;;  %v337_v39 = vmul.u32 %v330_v29, %v321_v54  ;;  %v234_v52 = vadd.s32 %v812_v41, %v809_v40 }
 0x119   :  { %v244_v47 = vsub.s32 0, %v242_v46  ;;  %v404_v60 = vshrl.u32 %v675_v53, %v401_v50  ;;  %v403_v0 = vshll.u32 %v674_v51, %v400_v30  ;;  %v407_v1 = vshrl.u32 %v676_v57, %v401_v50 }
 0x11a   :  { %v341_v58 = vsel %vm339_vm13, %v340_v55, %v857_v42  ;;  %v393_v7 = vand.u32 8388607, %v386_v48  ;;  %v399_v8 = vshrl.u32 %v817_v43, 5  ;;  %v413_v10 = vshrl.u32 %v678_v61, %v401_v50 }
 0x11b   :  { %v544_v56 = vmin.u32 %v244_v47, %v242_v46  ;;  %v342_v62 = vadd.s32 %v341_v58, %v337_v39  ;;  %v405_v11 = vor.u32 %v404_v60, %v403_v0  ;;  %v406_v12 = vshll.u32 %v675_v53, %v400_v30 }
 0x11c   :  { %v410_v13 = vshrl.u32 %v677_v59, %v401_v50  ;;  %v412_v15 = vshll.u32 %v677_v59, %v400_v30  ;;  %v416_v17 = vshrl.u32 %v679_v9, %v401_v50  ;;  %v409_v43 = vshll.u32 %v676_v57, %v400_v30 }
 0x11d   :  { %v246_v45 = vclz %v544_v56  ;;  %v343_v2 = vadd.s32 536870912, %v342_v62  ;;  %v408_v49 = vor.u32 %v407_v1, %v406_v12  ;;  %v264_v20 = vsub.s32 4, %v843_v21 }
 0x11e   :  { %v414_v24 = vor.u32 %v413_v10, %v412_v15  ;;  %v415_v53 = vshll.u32 %v678_v61, %v400_v30  ;;  %v411_v31 = vor.u32 %v410_v13, %v409_v43  ;;  %v394_v59 = vor.u32 8388608, %v393_v7 }
 0x11f   :  { %v545_v63 = vadd.s32 4294967294, %v246_v45  ;;  %v877_v41 = vshrl.u32 %v343_v2, 30  ;;  %vm418_vm15 = vcmp.lt.s32.totalorder %v399_v8, 1  ;;  %vm421_vm1 = vcmp.lt.s32.totalorder %v399_v8, 4 }
 0x120   :  { %v417_v34 = vor.u32 %v416_v17, %v415_v53  ;;  %v426_v57 = vsel %vm418_vm15, %v405_v11, %v408_v49  ;;  %v402_v47 = vshrl.u32 %v674_v51, %v401_v50  ;;  %vm420_vm2 = vcmp.lt.s32.totalorder %v399_v8, 3 }
 0x121   :  { %vm546_vm14 = vcmp.lt.s32.totalorder %v545_v63, 0  ;;  %v345_v23 = vshll.u32 %v877_v41, 30  ;;  %v427_v54 = vsel %vm421_vm1, %v414_v24, 920167782  ;;  %vm419_vm3 = vcmp.lt.s32.totalorder %v399_v8, 2 }
 0x122   :  { %v249_v40 = vsel %vm546_vm14, 0, %v545_v63  ;;  %v423_v61 = vsel %vm421_vm1, %v411_v31, 2102212464  ;;  %v428_v30 = vsel %vm420_vm2, %v411_v31, %v427_v54  ;;  %v430_v39 = vsel %vm418_vm15, %v408_v49, %v411_v31 }
 0x123   :  { %v250_v18 = vsub.s32 32, %v249_v40  ;;  %v254_v19 = vsub.s32 4294967266, %v249_v40  ;;  %v251_v26 = vshll.u32 %v242_v46, %v249_v40  ;;  %v346_v33 = vsub.s32 %v342_v62, %v345_v23 }
 0x124   :  { %v429_v56 = vsel %vm419_vm3, %v426_v57, %v428_v30  ;;  %v431_v58 = vsel %vm421_vm1, %v417_v34, 1326507024  ;;  %vm180_vm4 = vcmp.lt.s32.totalorder %v753_v16, 0  ;;  %v422_v50 = vsel %vm418_vm15, %v402_v47, %v405_v11 }
 0x125   :  { %v252_v27 = vshrl.u32 %v234_v52, %v250_v18  ;;  %v255_v29 = vadd.s32 127, %v254_v19  ;;  %v348_v42 = vsub.s32 0, %v346_v33  ;;  %v432_v62 = vsel %vm420_vm2, %v414_v24, %v431_v58 }
 0x126   :  { %v434_v52 = vshll.u32 %v394_v59, 8  ;;  %v424_v63 = vsel %vm420_vm2, %v408_v49, %v423_v61  ;;  %v433_v1 = vsel %vm419_vm3, %v430_v39, %v432_v62  ;;  %v265_v10 = vsel %vm180_vm4, %v264_v20, %v843_v21 }
 0x127   :  { %v253_v9 = vor.u32 %v252_v27, %v251_v26  ;;  %v256_v35 = vshll.u32 %v255_v29, 23  ;;  %v548_v46 = vmin.u32 %v348_v42, %v346_v33  ;;  %vm907_vm5 = vcmp.le.f32.partialorder %v178_v25, 0.7853982 }
 0x128   :  { %v895_v2 = vmul.u32.u64.low %v434_v52, %v429_v56  ;;  %v896_v7 = vmul.u32.u64.high %v434_v52, %v429_v56, %v895_v2  ;;  %v902_v13 = vmul.u32.u64.low %v434_v52, %v433_v1  ;;  %v903_v40 = vmul.u32.u64.high %v434_v52, %v433_v1, %v902_v13 }
 0x129   :  { %v257_v55 = vor.u32 4788187, %v256_v35  ;;  %v260_v60 = vcvt.s32.f32 %v253_v9  ;;  %v350_v51 = vclz %v548_v46  ;;  %v425_v17 = vsel %vm419_vm3, %v422_v50, %v424_v63  ;;  %v942_v63 = vld [vmem:[%s998_s3 + $0x3] ss:$0 sm:$0xff]  ;;  %s680_s3 = smov 32  }
 0x12a   :  { %v267_v21 = vsel %vm907_vm5, 0, %v265_v10  ;;  %v444_v49 = vadd.s32 1, %v896_v7  ;;  %v338_v25 = vadd.s32 %v856_v38, %v854_v37  ;;  %v441_v24 = vmul.u32 %v434_v52, %v425_v17 }
 0x12b   :  { %v258_v45 = vand.u32 2147483647, %v257_v55  ;;  %v549_v12 = vadd.s32 4294967294, %v350_v51  ;;  %vm443_vm7 = vc.u32 %v903_v40, %v895_v2  ;;  %v156_v31 = vmul.f32 0.5, %v757_v22 }
 0x12c   :  { %v445_v27 = vsel %vm443_vm7, %v444_v49, %v896_v7  ;;  %v271_v9 = vadd.s32 3, %v267_v21  ;;  %v368_v55 = vsub.s32 4, %v877_v41  ;;  %vm284_vm8 = vcmp.lt.s32.totalorder %v757_v22, 0 }
 0x12d   :  { %v261_v0 = vmul.f32 %v260_v60, %v258_v45  ;;  %vm550_vm6 = vcmp.lt.s32.totalorder %v549_v12, 0  ;;  %v446_v29 = vadd.s32 %v445_v27, %v441_v24  ;;  %vm934_vm10 = vcmp.le.f32.partialorder %v282_v44, 0.7853982 }
 0x12e   :  { %v353_v19 = vsel %vm550_vm6, 0, %v549_v12  ;;  %v272_v42 = vand.u32 3, %v271_v9  ;;  %v369_v51 = vsel %vm284_vm8, %v368_v55, %v877_v41  ;;  %vm270_vm13 = vweird.f32 %v753_v16 }
 0x12f   :  { %v262_v15 = vxor.u32 2147483648, %v261_v0  ;;  %v354_v20 = vsub.s32 32, %v353_v19  ;;  %v358_v23 = vsub.s32 4294967266, %v353_v19  ;;  %v355_v8 = vshll.u32 %v346_v33, %v353_v19 }
 0x130   :  { %v447_v37 = vadd.s32 536870912, %v446_v29  ;;  %vm277_vm9 = vcmp.eq.s32.totalorder %v272_v42, 2  ;;  %vm274_vm11 = vcmp.eq.s32.totalorder %v272_v42, 0  ;;  %vm273_vm12 = vcmp.lt.s32.totalorder %v272_v42, 2 }
 0x131   :  { %v263_v18 = vsel %vm180_vm4, %v262_v15, %v261_v0  ;;  %v356_v53 = vshrl.u32 %v338_v25, %v354_v20  ;;  %v359_v26 = vadd.s32 127, %v358_v23  ;;  %v371_v41 = vsel %vm934_vm10, 0, %v369_v51 }
 0x132   :  { %v266_v43 = vsel %vm907_vm5, %v753_v16, %v263_v18  ;;  %v926_v35 = vshrl.u32 %v447_v37, 30  ;;  %v375_v17 = vadd.s32 3, %v371_v41  ;;  %v442_v19 = vadd.s32 %v895_v2, %v903_v40 }
 0x133   :  { %602 = vcosq.f32 %v266_v43  ;;  %v357_v59 = vor.u32 %v356_v53, %v355_v8  ;;  %v360_v34 = vshll.u32 %v359_v26, 23  ;;  %v131_v25 = vmax.f32 %v757_v22, 0.0 }
 0x134   :  { %604 = vsinq.f32 %v266_v43  ;;  %v449_v47 = vshll.u32 %v926_v35, 30  ;;  %v376_v20 = vand.u32 3, %v375_v17  ;;  %v157_v26 = vmul.f32 0.5, %v751_v14 }
 0x135   :  { %v361_v38 = vor.u32 4788187, %v360_v34  ;;  %606 = vtanh.f32 %v156_v31  ;;  %v364_v57 = vcvt.s32.f32 %v357_v59  ;;  %v139_v2 = vmul.f32 %v768_v32, %v131_v25 }
 0x136   :  { %v450_v30 = vsub.s32 %v446_v29, %v449_v47  ;;  %608 = vtanh.f32 %v757_v22  ;;  %vm381_vm15 = vcmp.eq.s32.totalorder %v376_v20, 2  ;;  %vm378_vm1 = vcmp.eq.s32.totalorder %v376_v20, 0 }
 0x137   :  { %v362_v33 = vand.u32 2147483647, %v361_v38  ;;  %vm374_vm2 = vweird.f32 %v757_v22  ;;  %vm377_vm3 = vcmp.lt.s32.totalorder %v376_v20, 2  ;;  %vm388_vm4 = vcmp.lt.s32.totalorder %v751_v14, 0 }
 0x138   :  { %v452_v60 = vsub.s32 0, %v450_v30  ;;  %vm387_vm5 = vcmp.le.f32.partialorder %v386_v48, 0.7853982 }
 0x139   :  { %v365_v54 = vmul.f32 %v364_v57, %v362_v33 }
 0x13a   :  { %v552_v0 = vmin.u32 %v452_v60, %v450_v30 }
 0x13b   :  { %v366_v39 = vxor.u32 2147483648, %v365_v54 }
 0x13c   :  { %v454_v10 = vclz %v552_v0 }
 0x13d   :  { %v603_v61 = vpop.eup %602  ;;  %v367_v52 = vsel %vm284_vm8, %v366_v39, %v365_v54 }
 0x13e   :  { %v605_v46 = vpop.eup %604  ;;  %v278_v56 = vxor.u32 2147483648, %v603_v61  ;;  %v370_v44 = vsel %vm934_vm10, %v757_v22, %v367_v52  ;;  %v553_v15 = vadd.s32 4294967294, %v454_v10 }
 0x13f   :  { %v275_v58 = vxor.u32 2147483648, %v605_v46  ;;  %610 = vcosq.f32 %v370_v44  ;;  %v607_v12 = vpop.eup %606 }
 0x140   :  { %v279_v62 = vsel %vm277_vm9, %v278_v56, %v605_v46  ;;  %612 = vsinq.f32 %v370_v44  ;;  %v162_v18 = vadd.f32 1.0, %v607_v12  ;;  %vm554_vm14 = vcmp.lt.s32.totalorder %v553_v15, 0  ;;  %v609_v21 = vpop.eup %608 }
 0x141   :  { %v276_v50 = vsel %vm274_vm11, %v603_v61, %v275_v58  ;;  %v457_v16 = vsel %vm554_vm14, 0, %v553_v15  ;;  %v150_v29 = vmul.f32 %v609_v21, %v774_v36  ;;  %614 = vtanh.f32 %v157_v26 }
 0x142   :  { %v280_v1 = vsel %vm273_vm12, %v276_v50, %v279_v62  ;;  %v458_v49 = vsub.s32 32, %v457_v16  ;;  %v462_v43 = vsub.s32 4294967266, %v457_v16  ;;  %v165_v23 = vmul.f32 0.5, %v162_v18 }
 0x143   :  { %v281_v7 = vsel %vm270_vm13, nan, %v280_v1  ;;  %v459_v8 = vshll.u32 %v450_v30, %v457_v16  ;;  %v153_v57 = vadd.f32 %v150_v29, %v139_v2  ;;  %v472_v56 = vsub.s32 4, %v926_v35 }
 0x144   :  { %v495_v13 = vmul.f32 %v942_v63, %v281_v7  ;;  %v460_v24 = vshrl.u32 %v442_v19, %v458_v49  ;;  %v173_v9 = vmul.f32 %v794_v5, %v165_v23  ;;  %616 = vtanh.f32 %v751_v14 }
 0x145   :  { %v473_v45 = vsel %vm388_vm4, %v472_v56, %v926_v35  ;;  %v132_v1 = vmax.f32 %v751_v14, 0.0  ;;  %vm478_vm9 = vweird.f32 %v751_v14 }
 0x146   :  { %v498_v11 = vadd.f32 %v495_v13, %v800_v28  ;;  %v463_v28 = vadd.s32 127, %v462_v43  ;;  %v461_v59 = vor.u32 %v460_v24, %v459_v8  ;;  %v176_v61 = vadd.f32 %v173_v9, %v153_v57 }
 0x147   :  { %v475_v52 = vsel %vm387_vm5, 0, %v473_v45  ;;  %v140_v35 = vmul.f32 %v768_v32, %v132_v1 }
 0x148   :  { %504 = vrot.lane.b32.xlu1 %v498_v11, %s680_s3  ;;  %v464_v34 = vshll.u32 %v463_v28, 23  ;;  %v468_v54 = vcvt.s32.f32 %v461_v59  ;;  %v479_v51 = vadd.s32 3, %v475_v52 }
 0x149   :  { %v611_v53 = vpop.eup %610 }
 0x14a   :  { %v613_v27 = vpop.eup %612  ;;  %v382_v31 = vxor.u32 2147483648, %v611_v53  ;;  %v465_v38 = vor.u32 4788187, %v464_v34  ;;  %v480_v0 = vand.u32 3, %v479_v51 }
 0x14b   :  { %v379_v40 = vxor.u32 2147483648, %v613_v27  ;;  %v615_v62 = vpop.eup %614 }
 0x14c   :  { %v383_v37 = vsel %vm381_vm15, %v382_v31, %v613_v27  ;;  %v466_v47 = vand.u32 2147483647, %v465_v38  ;;  %v163_v50 = vadd.f32 1.0, %v615_v62  ;;  %vm485_vm6 = vcmp.eq.s32.totalorder %v480_v0, 2 }
 0x14d   :  { %v380_v33 = vsel %vm378_vm1, %v611_v53, %v379_v40  ;;  %vm482_vm7 = vcmp.eq.s32.totalorder %v480_v0, 0  ;;  %vm481_vm8 = vcmp.lt.s32.totalorder %v480_v0, 2 }
 0x14e   :  { %v384_v42 = vsel %vm377_vm3, %v380_v33, %v383_v37  ;;  %v469_v46 = vmul.f32 %v468_v54, %v466_v47  ;;  %v617_v44 = vpop.eup %616  ;;  %v166_v7 = vmul.f32 0.5, %v163_v50 }
 0x14f   :  { %v385_v55 = vsel %vm374_vm2, nan, %v384_v42  ;;  %v151_v48 = vmul.f32 %v617_v44, %v774_v36 }
 0x150   :  { %v496_v30 = vmul.f32 %v942_v63, %v385_v55  ;;  %v470_v58 = vxor.u32 2147483648, %v469_v46  ;;  %v174_v15 = vmul.f32 %v794_v5, %v166_v7 }
 0x151   :  { %v154_v18 = vadd.f32 %v151_v48, %v140_v35 }
 0x152   :  { %v499_v39 = vadd.f32 %v496_v30, %v176_v61  ;;  %v471_v22 = vsel %vm388_vm4, %v470_v58, %v469_v46 }
 0x153   :  { %v474_v60 = vsel %vm387_vm5, %v751_v14, %v471_v22  ;;  %v177_v19 = vadd.f32 %v174_v15, %v154_v18 }
 0x154   :  { %506 = vrot.lane.b32.xlu0 %v499_v39, %s680_s3  ;;  %618 = vcosq.f32 %v474_v60 }
 0x155   :  { %620 = vsinq.f32 %v474_v60 }
 0x15e   :  { %v619_v41 = vpop.eup %618 }
 0x15f   :  { %v621_v10 = vpop.eup %620  ;;  %v486_v12 = vxor.u32 2147483648, %v619_v41 }
 0x160   :  { %v483_v13 = vxor.u32 2147483648, %v621_v10 }
 0x161   :  { %v487_v11 = vsel %vm485_vm6, %v486_v12, %v621_v10 }
 0x162   :  { %v484_v17 = vsel %vm482_vm7, %v619_v41, %v483_v13 }
 0x163   :  { %v488_v21 = vsel %vm481_vm8, %v484_v17, %v487_v11 }
 0x164   :  { %v489_v16 = vsel %vm478_vm9, nan, %v488_v21 }
 0x165   :  { %v497_v49 = vmul.f32 %v942_v63, %v489_v16 }
 0x167   :  { %v500_v36 = vadd.f32 %v497_v49, %v177_v19 }
 0x169   :  { %508 = vrot.lane.b32.xlu1 %v500_v36, %s680_s3 }
 0x1ba   :  { %v505_v43 = vpop.permute.xlu1 %504 }
 0x1bb   :  { %v513_v32 = vsel %vm54_vm0, %v724_v3, %v505_v43 }
 0x1bc   :  { %516 = vst [vmem:[#allocation5] sm:$0xff] %v513_v32 }
 0x1c6   :  { %v507_v5 = vpop.permute.xlu0 %506 }
 0x1c7   :  { %v514_v25 = vsel %vm54_vm0, %v729_v4, %v507_v5 }
 0x1c8   :  { %517 = vst [vmem:[#allocation5 + $0x8] sm:$0xff] %v514_v25 }
 0x1db   :  { %v509_v14 = vpop.permute.xlu1 %508 }
 0x1dc   :  { %v515_v63 = vsel %vm54_vm0, %v736_v6, %v509_v14 }
 0x1dd   :  { %518 = vst [vmem:[#allocation5 + $0x10] sm:$0xff] %v515_v63 }
 0x1de   :  { %655 = shalt.err (!%p652_p12)
}
 0x1df   :  { %s656_s25 = scalar_lea.hbm %s999_s4, 384 }
 0x1e0   :  { %p657_p13 = scmp.ne.s32.totalorder %s999_s4, %s656_s25  ;;  %p660_p0 = scmp.lt.u32.totalorder %s656_s25, %s999_s4 }
 0x1e2   :  { %p662_p1 = pnand %p660_p0, %p657_p13 }
 0x1e4   :  { %665 = shalt.err (!%p662_p1)
}
 0x1e5   :  { %s682_s30 = smov 128   ;;  %s683_s5 = smov 8  }
 0x1e6   :  { %530 = dma.vmem_to_hbm [thread:$0]  %s525_s21, 384, %s999_s4, [#allocation4], %s682_s30, %s682_s30, %s683_s5  }
 0x1e7   :  { %668 = dma.done.wait [#allocation4], 384  }
 0x1e8   :  { %669 = vsyncadd [#allocation4], 4294966912 }
 0x1e9   :  { %534 = vsyncpa [#allocation3], 1 }
 0x1ea   :  { %535 = vsyncpa [#allocation4], 1 }

</bundles_post_ra>
